<compile_context>
chip_gen: v6e
topology: v6e:2x2x1
jax: 0.10.0
libtpu: 0.0.40
codegen_flags: <defaults>
</compile_context>

<pallas_src>
import functools
import math

import jax
import jax.numpy as jnp
from jax import lax
from jax.experimental import pallas as pl
from jax.experimental.pallas import tpu as pltpu

EPS = 1e-5  # torch.nn.LayerNorm default


# ----------------------------------------------------------------------------- helpers
def _round_up(x, m):
    return ((x + m - 1) // m) * m


_VMEM_CAP = None


def _vmem_capacity_bytes():
    """Physical VMEM capacity of the local TPU (conservative fallback)."""
    global _VMEM_CAP
    if _VMEM_CAP is None:
        try:
            _VMEM_CAP = int(pltpu.get_tpu_info().vmem_capacity_bytes)
        except Exception:  # pragma: no cover - older jax / non-TPU tracing
            _VMEM_CAP = 64 * 1024 * 1024
    return _VMEM_CAP


def _vmem_limit_bytes():
    # 48 MiB on 128-MiB parts (v5e/v6e), 28 MiB on 64-MiB parts (v7x) — actual
    # per-call usage is well below either, this just leaves scheduler headroom.
    return 48 * 1024 * 1024 if _vmem_capacity_bytes() >= 96 * 1024 * 1024 else 28 * 1024 * 1024


def _choose_tile_rows(n_rows, lane_dim, itemsize):
    """Row-tile size for a [n_rows, lane_dim] streaming LayerNorm."""
    pack = {4: 8, 2: 16, 1: 32}.get(int(itemsize), 8)
    n_rows = int(n_rows)
    if n_rows <= pack:
        return max(n_rows, 1)  # single full-array block (block dim == array dim is legal)

    if _vmem_capacity_bytes() >= 96 * 1024 * 1024:   # v5e / v6e: big tiles -> HBM roofline
        row_cap, tile_budget = 2048, 12 * 1024 * 1024
    else:                                            # v7x: 64 MiB VMEM, tighter budget
        row_cap, tile_budget = 1024, 6 * 1024 * 1024

    # 2x double-buffered input + 2x double-buffered output tiles in the I/O dtype,
    # plus ~3 fp32-sized in-kernel temporaries per live tile.
    bytes_per_row = lane_dim * (4 * int(itemsize) + 3 * 4)
    fit = (tile_budget // max(bytes_per_row, 1)) // pack * pack
    tile = max(pack, min(fit, row_cap))

    # Keep >= ~4 grid steps when the input is big enough so v7x's two TensorCores
    # both get pipelined work on the "parallel" axis.
    quarter = _round_up(-(-n_rows // 4), pack)
    tile = min(tile, max(quarter, pack))

    # Never exceed this type's own (rounded-up) row count (fixes skewed-type blow-up).
    tile = min(tile, _round_up(n_rows, pack))
    return tile


# ----------------------------------------------------------------------------- kernel
def _ln_kernel(x_ref, w_ref, b_ref, o_ref, *, seg_size, num_seg):
    """LayerNorm over `seg_size`-wide lane segments.

    x_ref/o_ref: (tile_rows, num_seg * seg_size); each lane-row packs `num_seg`
    logical rows. w_ref/b_ref: (1, num_seg * seg_size), already tiled per segment.
    """
    x = x_ref[...].astype(jnp.float32)
    inv_d = 1.0 / float(seg_size)

    def norm(xs):
        # One pass over xs: sum and sum-of-squares, var = E[x^2] - mean^2 (fp32).
        s1 = jnp.sum(xs, axis=-1, keepdims=True)
        s2 = jnp.sum(xs * xs, axis=-1, keepdims=True)
        mean = s1 * inv_d
        var = jnp.maximum(s2 * inv_d - mean * mean, 0.0)
        return (xs - mean) * lax.rsqrt(var + EPS)

    if num_seg == 1:
        xhat = norm(x)
    else:
        # Lane-dense packed path: per-segment (per logical row) stats via lane
        # slices; slices/concat ride the XLU, which has slack in this HBM-bound
        # kernel, while loads/stores stay full 128-lane width.
        # TODO(synk): a (128,128) block-diagonal ones matmul on the idle MXU also
        # works but needs guaranteed multi-pass f32 matmul precision.
        xhat = jnp.concatenate(
            [norm(x[:, s * seg_size:(s + 1) * seg_size]) for s in range(num_seg)],
            axis=-1)

    w = w_ref[...].astype(jnp.float32)
    b = b_ref[...].astype(jnp.float32)
    o_ref[...] = (xhat * w + b).astype(o_ref.dtype)


@functools.partial(jax.jit, static_argnames=("tile_rows", "pack_factor"))
def _layernorm_type(x, w, b, *, tile_rows, pack_factor):
    """LayerNorm over the last dim of x:[N, D] with affine (w, b):[D]."""
    n, d = x.shape
    pf = pack_factor
    if pf > 1:
        xl = x.reshape(n // pf, pf * d)            # contiguous -> free bitcast reshape
        wl = jnp.tile(w, pf).reshape(1, pf * d)    # tiny
        bl = jnp.tile(b, pf).reshape(1, pf * d)
    else:
        xl = x
        wl = w.reshape(1, d)
        bl = b.reshape(1, d)

    m, l = xl.shape
    kernel = functools.partial(_ln_kernel, seg_size=d, num_seg=pf)
    yl = pl.pallas_call(
        kernel,
        out_shape=jax.ShapeDtypeStruct((m, l), x.dtype),
        grid=(pl.cdiv(m, tile_rows),),
        in_specs=[
            pl.BlockSpec((tile_rows, l), lambda i: (i, 0)),
            pl.BlockSpec((1, l), lambda i: (0, 0)),   # resident: same block every step
            pl.BlockSpec((1, l), lambda i: (0, 0)),
        ],
        out_specs=pl.BlockSpec((tile_rows, l), lambda i: (i, 0)),
        compiler_params=pltpu.CompilerParams(
            dimension_semantics=("parallel",),
            vmem_limit_bytes=_vmem_limit_bytes(),
        ),
    )(xl, wl, bl)
    return yl.reshape(n, d)


# ----------------------------------------------------------------------------- module
class HLayerNormPallas:
    """Pallas equivalent of dhgas HLayerNorm: one LayerNorm(out_dim) per node type."""

    def __init__(self, out_dim, metadata, key):
        self.out_dim = out_dim
        node_types = metadata[0]
        self.params = {}
        for i, nt in enumerate(node_types):
            # torch default is weight=1, bias=0; perturb deterministically so the
            # affine path is actually exercised in tests.
            kw, kb = jax.random.split(jax.random.fold_in(key, i))
            weight = 1.0 + 0.1 * jax.random.normal(kw, (out_dim,), dtype=jnp.float32)
            bias = 0.1 * jax.random.normal(kb, (out_dim,), dtype=jnp.float32)
            self.params[nt] = (weight, bias)

    def __getitem__(self, index):
        return self.params[index]

    def reset_parameters(self):
        for nt in self.params:
            self.params[nt] = (jnp.ones((self.out_dim,), jnp.float32),
                               jnp.zeros((self.out_dim,), jnp.float32))

    def __call__(self, x_dict, *args, **kwargs):
        y_dict = {}
        d = self.out_dim
        for nt, x in x_dict.items():
            w, b = self.params[nt]
            orig_shape = x.shape
            n = int(math.prod(orig_shape[:-1])) if x.ndim > 1 else 1
            if n == 0:
                y_dict[nt] = x
                continue
            x2 = x.reshape(n, d)
            itemsize = jnp.dtype(x2.dtype).itemsize

            # Lane-dense packing: fold pf logical rows into one 128-lane row when legal.
            pf = 128 // d if (0 < d < 128 and 128 % d == 0) else 1
            if pf > 1 and n % pf != 0:
                pf = 1  # fall back to the generic (lane-sparse) path; still correct
            lane_dim = pf * d if pf > 1 else d
            tile_rows = _choose_tile_rows(n // pf, lane_dim, itemsize)

            y2 = _layernorm_type(x2, w, b, tile_rows=tile_rows, pack_factor=pf)
            y_dict[nt] = y2.reshape(orig_shape)
        return y_dict


# ----------------------------------------------------------------------------- tests
def _reference(x, w, b):
    x32 = x.astype(jnp.float32)
    mean = jnp.mean(x32, axis=-1, keepdims=True)
    var = jnp.mean((x32 - mean) ** 2, axis=-1, keepdims=True)
    y = (x32 - mean) / jnp.sqrt(var + EPS) * w + b
    return y.astype(x.dtype)


if __name__ == "__main__":
    key = jax.random.PRNGKey(0)

    # --- Test 1: D=32 — packed lane-dense path (author/paper) + generic fallback (venue, N%4!=0).
    node_types = ("author", "paper", "venue")
    metadata = (node_types, ())  # (node_types, edge_types), like PyG metadata
    model = HLayerNormPallas(32, metadata, jax.random.fold_in(key, 1000))
    x_dict = {
        "author": jax.random.normal(jax.random.fold_in(key, 1), (16, 32), dtype=jnp.float32),
        "paper": jax.random.normal(jax.random.fold_in(key, 2), (8, 32), dtype=jnp.float32),
        "venue": jax.random.normal(jax.random.fold_in(key, 3), (10, 32), dtype=jnp.float32),
    }
    y_dict = model(x_dict)
    jax.block_until_ready(y_dict)
    for nt, x in x_dict.items():
        w, b = model[nt]
        ref = _reference(x, w, b)
        assert y_dict[nt].shape == x.shape and y_dict[nt].dtype == x.dtype
        assert jnp.allclose(y_dict[nt], ref, atol=1e-5, rtol=1e-5), f"mismatch for {nt} (D=32)"

    # --- Test 2: D=128 lane-dense, row counts not multiples of the tile (partial boundary blocks).
    model2 = HLayerNormPallas(128, (("author", "paper"), ()), jax.random.fold_in(key, 2000))
    x_dict2 = {
        "author": jax.random.normal(jax.random.fold_in(key, 4), (40, 128), dtype=jnp.float32),
        "paper": jax.random.normal(jax.random.fold_in(key, 5), (20, 128), dtype=jnp.float32),
    }
    y_dict2 = model2(x_dict2)
    jax.block_until_ready(y_dict2)
    for nt, x in x_dict2.items():
        w, b = model2[nt]
        ref = _reference(x, w, b)
        assert y_dict2[nt].shape == x.shape and y_dict2[nt].dtype == x.dtype
        assert jnp.allclose(y_dict2[nt], ref, atol=1e-5, rtol=1e-5), f"mismatch for {nt} (D=128)"

    print("KERNEL_OK")
</pallas_src>

<mosaic_0001>
module attributes {stable_mosaic.version = 11 : i64} {
  func.func @_ln_kernel(%arg0: i32, %arg1: memref<4x128xf32, #tpu.memory_space<vmem>>, %arg2: memref<1x128xf32, #tpu.memory_space<vmem>>, %arg3: memref<1x128xf32, #tpu.memory_space<vmem>>, %arg4: memref<4x128xf32, #tpu.memory_space<vmem>>) attributes {dimension_semantics = [#tpu.dimension_semantics<parallel>], iteration_bounds = array<i64: 1>, scalar_prefetch = 0 : i64, scratch_operands = 0 : i64, tpu.core_type = #tpu.core_type<tc>, window_params = [{transform_indices = @transform_0, window_bounds = array<i64: 4, 128>}, {pipeline_mode = #tpu.pipeline_mode<synchronous>, transform_indices = @transform_1, window_bounds = array<i64: 1, 128>}, {pipeline_mode = #tpu.pipeline_mode<synchronous>, transform_indices = @transform_2, window_bounds = array<i64: 1, 128>}, {transform_indices = @transform_3, window_bounds = array<i64: 4, 128>}]} {
    %c0 = arith.constant 0 : index
    %c0_0 = arith.constant 0 : index
    %0 = vector.load %arg1[%c0, %c0_0] : memref<4x128xf32, #tpu.memory_space<vmem>>, vector<4x128xf32>
    %1 = vector.extract_strided_slice %0 {offsets = [0, 0], sizes = [4, 32], strides = [1, 1]} : vector<4x128xf32> to vector<4x32xf32>
    %cst = arith.constant dense<0.000000e+00> : vector<4xf32>
    %2 = vector.multi_reduction <add>, %1, %cst [1] : vector<4x32xf32> to vector<4xf32>
    %3 = vector.shape_cast %2 : vector<4xf32> to vector<4x1xf32>
    %4 = arith.mulf %1, %1 : vector<4x32xf32>
    %cst_1 = arith.constant dense<0.000000e+00> : vector<4xf32>
    %5 = vector.multi_reduction <add>, %4, %cst_1 [1] : vector<4x32xf32> to vector<4xf32>
    %6 = vector.shape_cast %5 : vector<4xf32> to vector<4x1xf32>
    %cst_2 = arith.constant 3.125000e-02 : f32
    %7 = vector.broadcast %cst_2 : f32 to vector<4x1xf32>
    %8 = arith.mulf %3, %7 : vector<4x1xf32>
    %cst_3 = arith.constant 3.125000e-02 : f32
    %9 = vector.broadcast %cst_3 : f32 to vector<4x1xf32>
    %10 = arith.mulf %6, %9 : vector<4x1xf32>
    %11 = arith.mulf %8, %8 : vector<4x1xf32>
    %12 = arith.subf %10, %11 : vector<4x1xf32>
    %cst_4 = arith.constant 0.000000e+00 : f32
    %13 = vector.broadcast %cst_4 : f32 to vector<4x1xf32>
    %14 = arith.maximumf %12, %13 : vector<4x1xf32>
    %15 = vector.broadcast %8 : vector<4x1xf32> to vector<4x32xf32>
    %16 = arith.subf %1, %15 : vector<4x32xf32>
    %cst_5 = arith.constant 9.99999974E-6 : f32
    %17 = vector.broadcast %cst_5 : f32 to vector<4x1xf32>
    %18 = arith.addf %14, %17 : vector<4x1xf32>
    %19 = math.rsqrt %18 : vector<4x1xf32>
    %20 = vector.broadcast %19 : vector<4x1xf32> to vector<4x32xf32>
    %21 = arith.mulf %16, %20 : vector<4x32xf32>
    %22 = vector.extract_strided_slice %0 {offsets = [0, 32], sizes = [4, 32], strides = [1, 1]} : vector<4x128xf32> to vector<4x32xf32>
    %cst_6 = arith.constant dense<0.000000e+00> : vector<4xf32>
    %23 = vector.multi_reduction <add>, %22, %cst_6 [1] : vector<4x32xf32> to vector<4xf32>
    %24 = vector.shape_cast %23 : vector<4xf32> to vector<4x1xf32>
    %25 = arith.mulf %22, %22 : vector<4x32xf32>
    %cst_7 = arith.constant dense<0.000000e+00> : vector<4xf32>
    %26 = vector.multi_reduction <add>, %25, %cst_7 [1] : vector<4x32xf32> to vector<4xf32>
    %27 = vector.shape_cast %26 : vector<4xf32> to vector<4x1xf32>
    %cst_8 = arith.constant 3.125000e-02 : f32
    %28 = vector.broadcast %cst_8 : f32 to vector<4x1xf32>
    %29 = arith.mulf %24, %28 : vector<4x1xf32>
    %cst_9 = arith.constant 3.125000e-02 : f32
    %30 = vector.broadcast %cst_9 : f32 to vector<4x1xf32>
    %31 = arith.mulf %27, %30 : vector<4x1xf32>
    %32 = arith.mulf %29, %29 : vector<4x1xf32>
    %33 = arith.subf %31, %32 : vector<4x1xf32>
    %cst_10 = arith.constant 0.000000e+00 : f32
    %34 = vector.broadcast %cst_10 : f32 to vector<4x1xf32>
    %35 = arith.maximumf %33, %34 : vector<4x1xf32>
    %36 = vector.broadcast %29 : vector<4x1xf32> to vector<4x32xf32>
    %37 = arith.subf %22, %36 : vector<4x32xf32>
    %cst_11 = arith.constant 9.99999974E-6 : f32
    %38 = vector.broadcast %cst_11 : f32 to vector<4x1xf32>
    %39 = arith.addf %35, %38 : vector<4x1xf32>
    %40 = math.rsqrt %39 : vector<4x1xf32>
    %41 = vector.broadcast %40 : vector<4x1xf32> to vector<4x32xf32>
    %42 = arith.mulf %37, %41 : vector<4x32xf32>
    %43 = vector.extract_strided_slice %0 {offsets = [0, 64], sizes = [4, 32], strides = [1, 1]} : vector<4x128xf32> to vector<4x32xf32>
    %cst_12 = arith.constant dense<0.000000e+00> : vector<4xf32>
    %44 = vector.multi_reduction <add>, %43, %cst_12 [1] : vector<4x32xf32> to vector<4xf32>
    %45 = vector.shape_cast %44 : vector<4xf32> to vector<4x1xf32>
    %46 = arith.mulf %43, %43 : vector<4x32xf32>
    %cst_13 = arith.constant dense<0.000000e+00> : vector<4xf32>
    %47 = vector.multi_reduction <add>, %46, %cst_13 [1] : vector<4x32xf32> to vector<4xf32>
    %48 = vector.shape_cast %47 : vector<4xf32> to vector<4x1xf32>
    %cst_14 = arith.constant 3.125000e-02 : f32
    %49 = vector.broadcast %cst_14 : f32 to vector<4x1xf32>
    %50 = arith.mulf %45, %49 : vector<4x1xf32>
    %cst_15 = arith.constant 3.125000e-02 : f32
    %51 = vector.broadcast %cst_15 : f32 to vector<4x1xf32>
    %52 = arith.mulf %48, %51 : vector<4x1xf32>
    %53 = arith.mulf %50, %50 : vector<4x1xf32>
    %54 = arith.subf %52, %53 : vector<4x1xf32>
    %cst_16 = arith.constant 0.000000e+00 : f32
    %55 = vector.broadcast %cst_16 : f32 to vector<4x1xf32>
    %56 = arith.maximumf %54, %55 : vector<4x1xf32>
    %57 = vector.broadcast %50 : vector<4x1xf32> to vector<4x32xf32>
    %58 = arith.subf %43, %57 : vector<4x32xf32>
    %cst_17 = arith.constant 9.99999974E-6 : f32
    %59 = vector.broadcast %cst_17 : f32 to vector<4x1xf32>
    %60 = arith.addf %56, %59 : vector<4x1xf32>
    %61 = math.rsqrt %60 : vector<4x1xf32>
    %62 = vector.broadcast %61 : vector<4x1xf32> to vector<4x32xf32>
    %63 = arith.mulf %58, %62 : vector<4x32xf32>
    %64 = vector.extract_strided_slice %0 {offsets = [0, 96], sizes = [4, 32], strides = [1, 1]} : vector<4x128xf32> to vector<4x32xf32>
    %cst_18 = arith.constant dense<0.000000e+00> : vector<4xf32>
    %65 = vector.multi_reduction <add>, %64, %cst_18 [1] : vector<4x32xf32> to vector<4xf32>
    %66 = vector.shape_cast %65 : vector<4xf32> to vector<4x1xf32>
    %67 = arith.mulf %64, %64 : vector<4x32xf32>
    %cst_19 = arith.constant dense<0.000000e+00> : vector<4xf32>
    %68 = vector.multi_reduction <add>, %67, %cst_19 [1] : vector<4x32xf32> to vector<4xf32>
    %69 = vector.shape_cast %68 : vector<4xf32> to vector<4x1xf32>
    %cst_20 = arith.constant 3.125000e-02 : f32
    %70 = vector.broadcast %cst_20 : f32 to vector<4x1xf32>
    %71 = arith.mulf %66, %70 : vector<4x1xf32>
    %cst_21 = arith.constant 3.125000e-02 : f32
    %72 = vector.broadcast %cst_21 : f32 to vector<4x1xf32>
    %73 = arith.mulf %69, %72 : vector<4x1xf32>
    %74 = arith.mulf %71, %71 : vector<4x1xf32>
    %75 = arith.subf %73, %74 : vector<4x1xf32>
    %cst_22 = arith.constant 0.000000e+00 : f32
    %76 = vector.broadcast %cst_22 : f32 to vector<4x1xf32>
    %77 = arith.maximumf %75, %76 : vector<4x1xf32>
    %78 = vector.broadcast %71 : vector<4x1xf32> to vector<4x32xf32>
    %79 = arith.subf %64, %78 : vector<4x32xf32>
    %cst_23 = arith.constant 9.99999974E-6 : f32
    %80 = vector.broadcast %cst_23 : f32 to vector<4x1xf32>
    %81 = arith.addf %77, %80 : vector<4x1xf32>
    %82 = math.rsqrt %81 : vector<4x1xf32>
    %83 = vector.broadcast %82 : vector<4x1xf32> to vector<4x32xf32>
    %84 = arith.mulf %79, %83 : vector<4x32xf32>
    %85 = tpu.concatenate %21, %42, %63, %84 in 1 : vector<4x32xf32>, vector<4x32xf32>, vector<4x32xf32>, vector<4x32xf32> -> vector<4x128xf32>
    %c0_24 = arith.constant 0 : index
    %c0_25 = arith.constant 0 : index
    %86 = vector.load %arg2[%c0_24, %c0_25] : memref<1x128xf32, #tpu.memory_space<vmem>>, vector<1x128xf32>
    %c0_26 = arith.constant 0 : index
    %c0_27 = arith.constant 0 : index
    %87 = vector.load %arg3[%c0_26, %c0_27] : memref<1x128xf32, #tpu.memory_space<vmem>>, vector<1x128xf32>
    %88 = vector.broadcast %86 : vector<1x128xf32> to vector<4x128xf32>
    %89 = arith.mulf %85, %88 : vector<4x128xf32>
    %90 = vector.broadcast %87 : vector<1x128xf32> to vector<4x128xf32>
    %91 = arith.addf %89, %90 : vector<4x128xf32>
    %c0_28 = arith.constant 0 : index
    %c0_29 = arith.constant 0 : index
    %92 = vector.load %arg4[%c0_28, %c0_29] : memref<4x128xf32, #tpu.memory_space<vmem>>, vector<4x128xf32>
    tpu.vector_store %arg4[%c0_28, %c0_29], %91 {strides = array<i32>} : memref<4x128xf32, #tpu.memory_space<vmem>>, vector<4x128xf32>,
    return
  }
  func.func @transform_0(%arg0: i32) -> (i32, i32) {
    %c0_i32 = arith.constant 0 : i32
    %c0_i32_0 = arith.constant 0 : i32
    return %arg0, %c0_i32 : i32, i32
  }
  func.func @transform_1(%arg0: i32) -> (i32, i32) {
    %c0_i32 = arith.constant 0 : i32
    %c0_i32_0 = arith.constant 0 : i32
    %c0_i32_1 = arith.constant 0 : i32
    return %c0_i32, %c0_i32_0 : i32, i32
  }
  func.func @transform_2(%arg0: i32) -> (i32, i32) {
    %c0_i32 = arith.constant 0 : i32
    %c0_i32_0 = arith.constant 0 : i32
    %c0_i32_1 = arith.constant 0 : i32
    return %c0_i32, %c0_i32_0 : i32, i32
  }
  func.func @transform_3(%arg0: i32) -> (i32, i32) {
    %c0_i32 = arith.constant 0 : i32
    %c0_i32_0 = arith.constant 0 : i32
    return %arg0, %c0_i32 : i32, i32
  }
}

</mosaic_0001>

<bundles_post_ra>
// kernel: tile.13
= control target key start
LH: loop header
LB: loop body
LE: loop exit
PB: predicated region body
PF: predicated region fallthrough
CT: control target
= control target key end

     0   :  { %s22_s0 = inlined_call_operand.vmem [shape: f32[32], index: 0, kind: input, shape index: {}]   ;;  %s23_s1 = inlined_call_operand.vmem [shape: f32[4,32], index: 1, kind: output, shape index: {}]  }
   0x1   :  { %v4_v0 = vld [vmem:[%s22_s0] ss:$0 sm:$0xff] }
   0x2   :  { %5 = vst [vmem:[%s23_s1] sm:$0xf] %v4_v0 }

// kernel: tile.14
= control target key start
LH: loop header
LB: loop body
LE: loop exit
PB: predicated region body
PF: predicated region fallthrough
CT: control target
= control target key end

     0   :  { %vm8_vm0 = vcmask 261120   ;;  %s40_s8 = smov 32   ;;  %s41_s9 = smov 64   ;;  %vm14_vm1 = vcmask 1048320   ;;  %vm20_vm2 = vcmask 785920   ;;  %vm26_vm3 = vcmask 523520   ;;  %s58_s0 = inlined_call_operand.vmem [shape: f32[4,32], index: 0, kind: input, shape index: {}]   ;;  %s59_s1 = inlined_call_operand.vmem [shape: f32[1,128], index: 1, kind: output, shape index: {}]  }
   0x1   :  { %v5_v0 = vld [vmem:[%s58_s0] sm:$0xf]  ;;  %s39_s0 = smov 96  }
   0x2   :  { %6 = vst [vmem:[#allocation1] sm:$0xf] %v5_v0 }
   0x9   :  { %v11_v1 = vld [vmem:[#allocation1 + $0x3] sm:$0x1]   ;;  %v23_v2 = vld [vmem:[#allocation1 + $0x1] sm:$0x1]   ;;  %v7_v3 = vld [vmem:[#allocation1] sm:$0x1]  }
   0xa   :  { %12 = vrot.lane.b32.xlu0 %v11_v1, %s39_s0  ;;  %24 = vrot.lane.b32.xlu1 %v23_v2, %s40_s8  ;;  %v17_v4 = vld [vmem:[#allocation1 + $0x2] sm:$0x1]   ;;  %9 = vst.msk [vmem:[#allocation0] sm:$0x1] %vm8_vm0, %v7_v3  }
   0xe   :  { %18 = vrot.lane.b32.xlu0 %v17_v4, %s41_s9 }
  0x7c   :  { %v13_v5 = vpop.permute.xlu0 %12   ;;  %v25_v6 = vpop.permute.xlu1 %24  }
  0x7d   :  { %15 = vst.msk [vmem:[#allocation0] sm:$0x1] %vm14_vm1, %v13_v5  }
  0x80   :  { %v19_v7 = vpop.permute.xlu0 %18  }
  0x81   :  { %21 = vst.msk [vmem:[#allocation0] sm:$0x1] %vm20_vm2, %v19_v7  }
  0x82   :  { %27 = vst.msk [vmem:[#allocation0] sm:$0x1] %vm26_vm3, %v25_v6  }
  0x89   :  { %v32_v8 = vld [vmem:[#allocation0] sm:$0x1] }
  0x8a   :  { %35 = vst [vmem:[%s59_s1] sm:$0x1] %v32_v8 }

// kernel: _layernorm_type.1
= control target key start
LH: loop header
LB: loop body
LE: loop exit
PB: predicated region body
PF: predicated region fallthrough
CT: control target
= control target key end

     0   :  { %vm15_vm0 = vcmask 257024   ;;  %s137_s14 = smov 96   ;;  %s138_s15 = smov 64   ;;  %vm97_vm1 = vcmask 261120   ;;  %vm99_vm2 = vcmask 523264   ;;  %vm101_vm3 = vcmask 785408   ;;  %s192_s0 = inlined_call_operand.vmem [shape: f32[4,128], index: 0, kind: input, shape index: {}]   ;;  %s193_s1 = inlined_call_operand.vmem [shape: f32[1,128], index: 1, kind: input, shape index: {}]   ;;  %s194_s2 = inlined_call_operand.vmem [shape: f32[1,128], index: 2, kind: input, shape index: {}]   ;;  %s195_s3 = inlined_call_operand.vmem [shape: f32[4,128], index: 3, kind: output, shape index: {}]  }
   0x1   :  { %v163_v0 = vld [vmem:[%s192_s0] sm:$0xf]  ;;  %s139_s16 = smov 32  }
   0x2   :  { %33 = vrot.lane.b32.xlu1 %v163_v0, %s137_s14  ;;  %v16_v1 = vsel %vm15_vm0, %v163_v0, 0.0  ;;  %v19_v2 = vmul.f32 %v163_v0, %v163_v0  ;;  %v124_v60 = vld [vmem:[%s193_s1] ss:$0 sm:$0xff] }
   0x3   :  { %17 = vadd.xlane.f32.xlu0 %v16_v1  ;;  %v125_v63 = vld [vmem:[%s194_s2] ss:$0 sm:$0xff] }
   0x4   :  { %v20_v3 = vsel %vm15_vm0, %v19_v2, 0.0 }
   0x6   :  { %55 = vrot.lane.b32.xlu1 %v163_v0, %s138_s15 }
   0x7   :  { %21 = vadd.xlane.f32.xlu0 %v20_v3 }
   0xa   :  { %76 = vrot.lane.b32.xlu1 %v163_v0, %s139_s16 }
   0xe   :  { %61 = vrot.lane.b32.xlu1 %v19_v2, %s138_s15 }
  0x12   :  { %82 = vrot.lane.b32.xlu1 %v19_v2, %s139_s16 }
  0x1d   :  { %40 = vrot.lane.b32.xlu0 %v19_v2, %s137_s14 }
  0x74   :  { %v34_v4 = vpop.permute.xlu1 %33 }
  0x75   :  { %v36_v5 = vsel %vm15_vm0, %v34_v4, 0.0 }
  0x76   :  { %37 = vadd.xlane.f32.xlu1 %v36_v5 }
  0x78   :  { %v56_v6 = vpop.permute.xlu1 %55 }
  0x79   :  { %v58_v7 = vsel %vm15_vm0, %v56_v6, 0.0 }
  0x7a   :  { %59 = vadd.xlane.f32.xlu1 %v58_v7 }
  0x7c   :  { %v77_v8 = vpop.permute.xlu1 %76 }
  0x7d   :  { %v79_v23 = vsel %vm15_vm0, %v77_v8, 0.0 }
  0x80   :  { %v62_v9 = vpop.permute.xlu1 %61 }
  0x81   :  { %v64_v10 = vsel %vm15_vm0, %v62_v9, 0.0 }
  0x82   :  { %65 = vadd.xlane.f32.xlu1 %v64_v10 }
  0x84   :  { %v83_v11 = vpop.permute.xlu1 %82 }
  0x85   :  { %v85_v12 = vsel %vm15_vm0, %v83_v11, 0.0 }
  0x86   :  { %86 = vadd.xlane.f32.xlu1 %v85_v12 }
  0x8c   :  { %v18_v13 = vpop.xlane.xlu0 %17 }
  0x8d   :  { %v23_v14 = vmul.f32 0.03125, %v18_v13 }
  0x8f   :  { %v25_v16 = vmul.f32 %v23_v14, %v23_v14  ;;  %v28_v24 = vsub.f32 %v163_v0, %v23_v14 }
  0x90   :  { %v22_v15 = vpop.xlane.xlu0 %21 }
  0x91   :  { %v24_v17 = vmul.f32 0.03125, %v22_v15 }
  0x93   :  { %v26_v18 = vsub.f32 %v24_v17, %v25_v16 }
  0x94   :  { %v41_v19 = vpop.permute.xlu0 %40 }
  0x95   :  { %v27_v20 = vmax.f32 %v26_v18, 0.0  ;;  %v43_v21 = vsel %vm15_vm0, %v41_v19, 0.0 }
  0x96   :  { %44 = vadd.xlane.f32.xlu0 %v43_v21 }
  0x97   :  { %v29_v22 = vadd.f32 1e-05, %v27_v20 }
  0x99   :  { %129 = vrsqrt.f32 %v29_v22 }
  0x9a   :  { %80 = vadd.xlane.f32.xlu0 %v79_v23 }
  0xa6   :  { %v130_v25 = vpop.eup %129 }
  0xa7   :  { %v31_v26 = vmul.f32 %v130_v25, %v28_v24 }
  0xff   :  { %v38_v27 = vpop.xlane.xlu1 %37 }
 0x100   :  { %v46_v33 = vmul.f32 0.03125, %v38_v27 }
 0x102   :  { %v48_v36 = vmul.f32 %v46_v33, %v46_v33  ;;  %v51_v51 = vsub.f32 %v163_v0, %v46_v33 }
 0x103   :  { %v60_v28 = vpop.xlane.xlu1 %59 }
 0x104   :  { %v67_v29 = vmul.f32 0.03125, %v60_v28 }
 0x106   :  { %v69_v31 = vmul.f32 %v67_v29, %v67_v29  ;;  %v72_v55 = vsub.f32 %v163_v0, %v67_v29 }
 0x10b   :  { %v66_v30 = vpop.xlane.xlu1 %65 }
 0x10c   :  { %v68_v32 = vmul.f32 0.03125, %v66_v30 }
 0x10e   :  { %v70_v34 = vsub.f32 %v68_v32, %v69_v31 }
 0x10f   :  { %v87_v38 = vpop.xlane.xlu1 %86 }
 0x110   :  { %v71_v40 = vmax.f32 %v70_v34, 0.0  ;;  %v89_v44 = vmul.f32 0.03125, %v87_v38 }
 0x112   :  { %v73_v47 = vadd.f32 1e-05, %v71_v40 }
 0x11f   :  { %v45_v35 = vpop.xlane.xlu0 %44 }
 0x120   :  { %v47_v37 = vmul.f32 0.03125, %v45_v35 }
 0x122   :  { %v49_v39 = vsub.f32 %v47_v37, %v48_v36 }
 0x123   :  { %v81_v41 = vpop.xlane.xlu0 %80 }
 0x124   :  { %v50_v42 = vmax.f32 %v49_v39, 0.0  ;;  %v88_v43 = vmul.f32 0.03125, %v81_v41 }
 0x126   :  { %v52_v45 = vadd.f32 1e-05, %v50_v42  ;;  %v90_v46 = vmul.f32 %v88_v43, %v88_v43  ;;  %v93_v57 = vsub.f32 %v163_v0, %v88_v43 }
 0x128   :  { %131 = vrsqrt.f32 %v52_v45  ;;  %v91_v48 = vsub.f32 %v89_v44, %v90_v46 }
 0x129   :  { %133 = vrsqrt.f32 %v73_v47 }
 0x12a   :  { %v92_v49 = vmax.f32 %v91_v48, 0.0 }
 0x12c   :  { %v94_v50 = vadd.f32 1e-05, %v92_v49 }
 0x12e   :  { %135 = vrsqrt.f32 %v94_v50 }
 0x135   :  { %v132_v52 = vpop.eup %131 }
 0x136   :  { %v54_v53 = vmul.f32 %v132_v52, %v51_v51  ;;  %v134_v54 = vpop.eup %133 }
 0x137   :  { %v75_v59 = vmul.f32 %v134_v54, %v72_v55 }
 0x138   :  { %v98_v56 = vsel %vm97_vm1, %v31_v26, %v54_v53 }
 0x139   :  { %v100_v62 = vsel %vm99_vm2, %v98_v56, %v75_v59 }
 0x13b   :  { %v136_v58 = vpop.eup %135 }
 0x13c   :  { %v96_v61 = vmul.f32 %v136_v58, %v93_v57 }
 0x13e   :  { %v102_v1 = vsel %vm101_vm3, %v100_v62, %v96_v61 }
 0x13f   :  { %v111_v2 = vmul.f32 %v124_v60, %v102_v1 }
 0x141   :  { %v118_v3 = vadd.f32 %v125_v63, %v111_v2 }
 0x143   :  { %119 = vst [vmem:[%s195_s3] sm:$0xf] %v118_v3 }

</bundles_post_ra>
